<compile_context>
chip_gen: v5e
topology: v5e:2x2
jax: 0.10.0
libtpu: 0.0.40
codegen_flags: <defaults>
</compile_context>

<pallas_src>
import jax
import jax.numpy as jnp
from jax.experimental import pallas as pl
from jax.experimental.pallas import tpu as pltpu


def _embeddings_kernel(wid_ref, pid_ref,            # scalar prefetch (SMEM ids)
                       tid_ref, ttab_ref,           # VMEM inputs
                       wtab_hbm, ptab_hbm,          # HBM (ANY) tables
                       out_ref,                     # VMEM output tile
                       wbuf, pbuf, sems):           # scratch
    tr, hd = out_ref.shape
    base = pl.program_id(0) * tr

    def start_row(r):
        w = wid_ref[base + r]
        p = pid_ref[base + r]
        pltpu.make_async_copy(wtab_hbm.at[pl.ds(w, 1)],
                              wbuf.at[pl.ds(r, 1)], sems.at[0]).start()
        pltpu.make_async_copy(ptab_hbm.at[pl.ds(p, 1)],
                              pbuf.at[pl.ds(r, 1)], sems.at[1]).start()

    def wait_row(r):
        # Descriptor only needs the same (1, H) size + the same semaphore.
        pltpu.make_async_copy(wtab_hbm.at[pl.ds(0, 1)],
                              wbuf.at[pl.ds(r, 1)], sems.at[0]).wait()
        pltpu.make_async_copy(ptab_hbm.at[pl.ds(0, 1)],
                              pbuf.at[pl.ds(r, 1)], sems.at[1]).wait()

    # Keep up to `window` row-gathers in flight per table.
    window = min(tr, 8)
    for r in range(window):                  # static prime of the DMA window
        start_row(r)

    @pl.loop(0, tr)
    def _(r):
        @pl.when(r + window < tr)
        def _():
            start_row(r + window)
        wait_row(r)

    # Token-type lookup: tiny vocab -> pure VPU select (no MXU).
    tid = tid_ref[...]                                   # (tr, 1) int32
    ttab = ttab_ref[...].astype(jnp.float32)             # (Vt, H)
    type_emb = ttab[0][None, :]
    for t in range(1, ttab.shape[0]):
        type_emb = jnp.where(tid == t, ttab[t][None, :], type_emb)

    acc = (wbuf[...].astype(jnp.float32)
           + pbuf[...].astype(jnp.float32)
           + type_emb)
    out_ref[...] = acc.astype(out_ref.dtype)


def bert_embeddings_forward(params, input_ids, token_type_ids=None,
                            position_ids=None, past_key_values_length=0,
                            tile_rows=256):
    """Mirrors BertEmbeddings.forward (absolute position embeddings)."""
    word_tab, pos_tab, type_tab = params
    B, S = input_ids.shape
    H = word_tab.shape[1]
    Vt = type_tab.shape[0]
    out_dtype = word_tab.dtype

    if position_ids is None:
        position_ids = jnp.broadcast_to(
            past_key_values_length + jnp.arange(S, dtype=jnp.int32)[None, :],
            (B, S))
    else:
        position_ids = jnp.broadcast_to(position_ids, (B, S))
    if token_type_ids is None:
        token_type_ids = jnp.zeros((B, S), jnp.int32)

    # Flatten (B, S) -> N rows; tile the grid over rows.
    N = B * S
    tr = max(8, min(tile_rows, N))
    tr = (tr // 8) * 8                        # sublane-aligned row tile
    n_pad = pl.cdiv(N, tr) * tr

    def flat_ids(x):
        x = x.astype(jnp.int32).reshape(N)
        if n_pad != N:
            x = jnp.concatenate([x, jnp.zeros((n_pad - N,), jnp.int32)])
        return x

    wid = flat_ids(input_ids)                 # SMEM (scalar prefetch)
    pid = flat_ids(position_ids)              # SMEM (scalar prefetch)
    tid = flat_ids(token_type_ids).reshape(n_pad, 1)

    itemsize = jnp.dtype(out_dtype).itemsize
    cost = pl.CostEstimate(
        flops=3 * n_pad * H,
        transcendentals=0,
        bytes_accessed=(2 * n_pad * H + Vt * H + n_pad * H) * itemsize
                       + 3 * n_pad * 4)

    out = pl.pallas_call(
        _embeddings_kernel,
        out_shape=jax.ShapeDtypeStruct((n_pad, H), out_dtype),
        grid_spec=pltpu.PrefetchScalarGridSpec(
            num_scalar_prefetch=2,            # word ids, position ids
            grid=(n_pad // tr,),
            in_specs=[
                pl.BlockSpec((tr, 1), lambda i, *_: (i, 0)),   # token-type ids
                pl.BlockSpec((Vt, H), lambda i, *_: (0, 0)),   # type table (VMEM resident)
                pl.BlockSpec(memory_space=pl.ANY),             # word table (HBM)
                pl.BlockSpec(memory_space=pl.ANY),             # position table (HBM)
            ],
            out_specs=pl.BlockSpec((tr, H), lambda i, *_: (i, 0)),
            scratch_shapes=[
                pltpu.VMEM((tr, H), word_tab.dtype),           # gathered word rows
                pltpu.VMEM((tr, H), pos_tab.dtype),            # gathered pos rows
                pltpu.SemaphoreType.DMA((2,)),
            ]),
        compiler_params=pltpu.CompilerParams(
            dimension_semantics=("parallel",)),
        cost_estimate=cost,
    )(wid, pid, tid, type_tab, word_tab, pos_tab)

    return out[:N].reshape(B, S, H)


def reference_forward(params, input_ids, token_type_ids=None,
                      position_ids=None, past_key_values_length=0):
    """Pure-JAX mirror of the torch forward (for correctness checking)."""
    word_tab, pos_tab, type_tab = params
    B, S = input_ids.shape
    if position_ids is None:
        position_ids = jnp.broadcast_to(
            past_key_values_length + jnp.arange(S, dtype=jnp.int32)[None, :],
            (B, S))
    else:
        position_ids = jnp.broadcast_to(position_ids, (B, S))
    if token_type_ids is None:
        token_type_ids = jnp.zeros((B, S), jnp.int32)
    emb = word_tab[input_ids] + type_tab[token_type_ids]
    emb = emb + pos_tab[position_ids]
    return emb


if __name__ == "__main__":
    # Small, self-consistent config (hidden kept at 128 so stores are lane-dense).
    VOCAB_SIZE = 512
    HIDDEN_SIZE = 128
    MAX_POSITION_EMBEDDINGS = 64
    TYPE_VOCAB_SIZE = 2
    PADDING_IDX = 0

    B, S = 2, 8

    key = jax.random.PRNGKey(0)
    k_w, k_p, k_t, k_ids, k_tt = jax.random.split(key, 5)

    word_tab = 0.02 * jax.random.normal(k_w, (VOCAB_SIZE, HIDDEN_SIZE), jnp.float32)
    word_tab = word_tab.at[PADDING_IDX].set(0.0)   # nn.Embedding(padding_idx=...) init
    pos_tab = 0.02 * jax.random.normal(
        k_p, (MAX_POSITION_EMBEDDINGS, HIDDEN_SIZE), jnp.float32)
    type_tab = 0.02 * jax.random.normal(
        k_t, (TYPE_VOCAB_SIZE, HIDDEN_SIZE), jnp.float32)
    params = (word_tab, pos_tab, type_tab)

    input_ids = jax.random.randint(k_ids, (B, S), 0, VOCAB_SIZE, jnp.int32)
    input_ids = input_ids.at[0, -1].set(PADDING_IDX)        # exercise padding row
    token_type_ids = jax.random.randint(k_tt, (B, S), 0, TYPE_VOCAB_SIZE, jnp.int32)

    # tile_rows=8 -> grid=(2,), exercising the multi-step "parallel" row axis.
    out = bert_embeddings_forward(params, input_ids,
                                  token_type_ids=token_type_ids, tile_rows=8)
    out = jax.block_until_ready(out)

    ref = jax.block_until_ready(
        reference_forward(params, input_ids, token_type_ids=token_type_ids))
    rel_err = float(jnp.max(jnp.abs(out - ref)) / (jnp.max(jnp.abs(ref)) + 1e-12))
    assert out.shape == (B, S, HIDDEN_SIZE)
    assert rel_err < 1e-5, f"kernel/reference mismatch, rel err = {rel_err}"
    print("KERNEL_OK")
</pallas_src>

<mosaic_0001>
module attributes {stable_mosaic.version = 11 : i64} {
  func.func @_embeddings_kernel(%arg0: i32, %arg1: memref<16xi32, #tpu.memory_space<smem>>, %arg2: memref<16xi32, #tpu.memory_space<smem>>, %arg3: memref<8x1xi32, #tpu.memory_space<vmem>>, %arg4: memref<2x128xf32, #tpu.memory_space<vmem>>, %arg5: memref<512x128xf32, #tpu.memory_space<any>>, %arg6: memref<64x128xf32, #tpu.memory_space<any>>, %arg7: memref<8x128xf32, #tpu.memory_space<vmem>>, %arg8: memref<8x128xf32, #tpu.memory_space<vmem>>, %arg9: memref<8x128xf32, #tpu.memory_space<vmem>>, %arg10: memref<2x!tpu.dma_semaphore, #tpu.memory_space<semaphore_mem>>) attributes {dimension_semantics = [#tpu.dimension_semantics<parallel>], iteration_bounds = array<i64: 2>, scalar_prefetch = 2 : i64, scratch_operands = 3 : i64, tpu.core_type = #tpu.core_type<tc>, window_params = [{transform_indices = @transform_0, window_bounds = array<i64: 8, 1>}, {pipeline_mode = #tpu.pipeline_mode<synchronous>, transform_indices = @transform_1, window_bounds = array<i64: 2, 128>}, {}, {}, {transform_indices = @transform_4, window_bounds = array<i64: 8, 128>}]} {
    %c8_i32 = arith.constant 8 : i32
    %0 = arith.muli %arg0, %c8_i32 : i32
    %c0_i32 = arith.constant 0 : i32
    %1 = arith.addi %0, %c0_i32 : i32
    %2 = arith.index_cast %1 : i32 to index
    %3 = memref.load %arg1[%2] : memref<16xi32, #tpu.memory_space<smem>>
    %c0_i32_0 = arith.constant 0 : i32
    %4 = arith.addi %0, %c0_i32_0 : i32
    %5 = arith.index_cast %4 : i32 to index
    %6 = memref.load %arg2[%5] : memref<16xi32, #tpu.memory_space<smem>>
    %c0_i32_1 = arith.constant 0 : i32
    %c0_i32_2 = arith.constant 0 : i32
    %7 = tpu.memref_slice %arg5[%3, %c0_i32_2] : memref<512x128xf32, #tpu.memory_space<any>> -> memref<1x128xf32, #tpu.memory_space<any>>
    %c0_i32_3 = arith.constant 0 : i32
    %c0_i32_4 = arith.constant 0 : i32
    %8 = tpu.memref_slice %arg8[%c0_i32_3, %c0_i32_4] : memref<8x128xf32, #tpu.memory_space<vmem>> -> memref<1x128xf32, #tpu.memory_space<vmem>>
    %9 = tpu.memref_slice %arg10[%c0_i32_1] : memref<2x!tpu.dma_semaphore, #tpu.memory_space<semaphore_mem>> -> memref<1x!tpu.dma_semaphore, #tpu.memory_space<semaphore_mem>>
    %10 = tpu.memref_squeeze %9 : memref<1x!tpu.dma_semaphore, #tpu.memory_space<semaphore_mem>> -> memref<!tpu.dma_semaphore, #tpu.memory_space<semaphore_mem>>
    tpu.enqueue_dma source(%7 : memref<1x128xf32, #tpu.memory_space<any>>) target(%8 : memref<1x128xf32, #tpu.memory_space<vmem>>) target_semaphore(%10 : memref<!tpu.dma_semaphore, #tpu.memory_space<semaphore_mem>>)
    %c1_i32 = arith.constant 1 : i32
    %c0_i32_5 = arith.constant 0 : i32
    %11 = tpu.memref_slice %arg6[%6, %c0_i32_5] : memref<64x128xf32, #tpu.memory_space<any>> -> memref<1x128xf32, #tpu.memory_space<any>>
    %c0_i32_6 = arith.constant 0 : i32
    %c0_i32_7 = arith.constant 0 : i32
    %12 = tpu.memref_slice %arg9[%c0_i32_6, %c0_i32_7] : memref<8x128xf32, #tpu.memory_space<vmem>> -> memref<1x128xf32, #tpu.memory_space<vmem>>
    %13 = tpu.memref_slice %arg10[%c1_i32] : memref<2x!tpu.dma_semaphore, #tpu.memory_space<semaphore_mem>> -> memref<1x!tpu.dma_semaphore, #tpu.memory_space<semaphore_mem>>
    %14 = tpu.memref_squeeze %13 : memref<1x!tpu.dma_semaphore, #tpu.memory_space<semaphore_mem>> -> memref<!tpu.dma_semaphore, #tpu.memory_space<semaphore_mem>>
    tpu.enqueue_dma source(%11 : memref<1x128xf32, #tpu.memory_space<any>>) target(%12 : memref<1x128xf32, #tpu.memory_space<vmem>>) target_semaphore(%14 : memref<!tpu.dma_semaphore, #tpu.memory_space<semaphore_mem>>)
    %c1_i32_8 = arith.constant 1 : i32
    %15 = arith.addi %0, %c1_i32_8 : i32
    %16 = arith.index_cast %15 : i32 to index
    %17 = memref.load %arg1[%16] : memref<16xi32, #tpu.memory_space<smem>>
    %c1_i32_9 = arith.constant 1 : i32
    %18 = arith.addi %0, %c1_i32_9 : i32
    %19 = arith.index_cast %18 : i32 to index
    %20 = memref.load %arg2[%19] : memref<16xi32, #tpu.memory_space<smem>>
    %c0_i32_10 = arith.constant 0 : i32
    %c0_i32_11 = arith.constant 0 : i32
    %21 = tpu.memref_slice %arg5[%17, %c0_i32_11] : memref<512x128xf32, #tpu.memory_space<any>> -> memref<1x128xf32, #tpu.memory_space<any>>
    %c1_i32_12 = arith.constant 1 : i32
    %c0_i32_13 = arith.constant 0 : i32
    %22 = tpu.memref_slice %arg8[%c1_i32_12, %c0_i32_13] : memref<8x128xf32, #tpu.memory_space<vmem>> -> memref<1x128xf32, #tpu.memory_space<vmem>>
    %23 = tpu.memref_slice %arg10[%c0_i32_10] : memref<2x!tpu.dma_semaphore, #tpu.memory_space<semaphore_mem>> -> memref<1x!tpu.dma_semaphore, #tpu.memory_space<semaphore_mem>>
    %24 = tpu.memref_squeeze %23 : memref<1x!tpu.dma_semaphore, #tpu.memory_space<semaphore_mem>> -> memref<!tpu.dma_semaphore, #tpu.memory_space<semaphore_mem>>
    tpu.enqueue_dma source(%21 : memref<1x128xf32, #tpu.memory_space<any>>) target(%22 : memref<1x128xf32, #tpu.memory_space<vmem>>) target_semaphore(%24 : memref<!tpu.dma_semaphore, #tpu.memory_space<semaphore_mem>>)
    %c1_i32_14 = arith.constant 1 : i32
    %c0_i32_15 = arith.constant 0 : i32
    %25 = tpu.memref_slice %arg6[%20, %c0_i32_15] : memref<64x128xf32, #tpu.memory_space<any>> -> memref<1x128xf32, #tpu.memory_space<any>>
    %c1_i32_16 = arith.constant 1 : i32
    %c0_i32_17 = arith.constant 0 : i32
    %26 = tpu.memref_slice %arg9[%c1_i32_16, %c0_i32_17] : memref<8x128xf32, #tpu.memory_space<vmem>> -> memref<1x128xf32, #tpu.memory_space<vmem>>
    %27 = tpu.memref_slice %arg10[%c1_i32_14] : memref<2x!tpu.dma_semaphore, #tpu.memory_space<semaphore_mem>> -> memref<1x!tpu.dma_semaphore, #tpu.memory_space<semaphore_mem>>
    %28 = tpu.memref_squeeze %27 : memref<1x!tpu.dma_semaphore, #tpu.memory_space<semaphore_mem>> -> memref<!tpu.dma_semaphore, #tpu.memory_space<semaphore_mem>>
    tpu.enqueue_dma source(%25 : memref<1x128xf32, #tpu.memory_space<any>>) target(%26 : memref<1x128xf32, #tpu.memory_space<vmem>>) target_semaphore(%28 : memref<!tpu.dma_semaphore, #tpu.memory_space<semaphore_mem>>)
    %c2_i32 = arith.constant 2 : i32
    %29 = arith.addi %0, %c2_i32 : i32
    %30 = arith.index_cast %29 : i32 to index
    %31 = memref.load %arg1[%30] : memref<16xi32, #tpu.memory_space<smem>>
    %c2_i32_18 = arith.constant 2 : i32
    %32 = arith.addi %0, %c2_i32_18 : i32
    %33 = arith.index_cast %32 : i32 to index
    %34 = memref.load %arg2[%33] : memref<16xi32, #tpu.memory_space<smem>>
    %c0_i32_19 = arith.constant 0 : i32
    %c0_i32_20 = arith.constant 0 : i32
    %35 = tpu.memref_slice %arg5[%31, %c0_i32_20] : memref<512x128xf32, #tpu.memory_space<any>> -> memref<1x128xf32, #tpu.memory_space<any>>
    %c2_i32_21 = arith.constant 2 : i32
    %c0_i32_22 = arith.constant 0 : i32
    %36 = tpu.memref_slice %arg8[%c2_i32_21, %c0_i32_22] : memref<8x128xf32, #tpu.memory_space<vmem>> -> memref<1x128xf32, #tpu.memory_space<vmem>>
    %37 = tpu.memref_slice %arg10[%c0_i32_19] : memref<2x!tpu.dma_semaphore, #tpu.memory_space<semaphore_mem>> -> memref<1x!tpu.dma_semaphore, #tpu.memory_space<semaphore_mem>>
    %38 = tpu.memref_squeeze %37 : memref<1x!tpu.dma_semaphore, #tpu.memory_space<semaphore_mem>> -> memref<!tpu.dma_semaphore, #tpu.memory_space<semaphore_mem>>
    tpu.enqueue_dma source(%35 : memref<1x128xf32, #tpu.memory_space<any>>) target(%36 : memref<1x128xf32, #tpu.memory_space<vmem>>) target_semaphore(%38 : memref<!tpu.dma_semaphore, #tpu.memory_space<semaphore_mem>>)
    %c1_i32_23 = arith.constant 1 : i32
    %c0_i32_24 = arith.constant 0 : i32
    %39 = tpu.memref_slice %arg6[%34, %c0_i32_24] : memref<64x128xf32, #tpu.memory_space<any>> -> memref<1x128xf32, #tpu.memory_space<any>>
    %c2_i32_25 = arith.constant 2 : i32
    %c0_i32_26 = arith.constant 0 : i32
    %40 = tpu.memref_slice %arg9[%c2_i32_25, %c0_i32_26] : memref<8x128xf32, #tpu.memory_space<vmem>> -> memref<1x128xf32, #tpu.memory_space<vmem>>
    %41 = tpu.memref_slice %arg10[%c1_i32_23] : memref<2x!tpu.dma_semaphore, #tpu.memory_space<semaphore_mem>> -> memref<1x!tpu.dma_semaphore, #tpu.memory_space<semaphore_mem>>
    %42 = tpu.memref_squeeze %41 : memref<1x!tpu.dma_semaphore, #tpu.memory_space<semaphore_mem>> -> memref<!tpu.dma_semaphore, #tpu.memory_space<semaphore_mem>>
    tpu.enqueue_dma source(%39 : memref<1x128xf32, #tpu.memory_space<any>>) target(%40 : memref<1x128xf32, #tpu.memory_space<vmem>>) target_semaphore(%42 : memref<!tpu.dma_semaphore, #tpu.memory_space<semaphore_mem>>)
    %c3_i32 = arith.constant 3 : i32
    %43 = arith.addi %0, %c3_i32 : i32
    %44 = arith.index_cast %43 : i32 to index
    %45 = memref.load %arg1[%44] : memref<16xi32, #tpu.memory_space<smem>>
    %c3_i32_27 = arith.constant 3 : i32
    %46 = arith.addi %0, %c3_i32_27 : i32
    %47 = arith.index_cast %46 : i32 to index
    %48 = memref.load %arg2[%47] : memref<16xi32, #tpu.memory_space<smem>>
    %c0_i32_28 = arith.constant 0 : i32
    %c0_i32_29 = arith.constant 0 : i32
    %49 = tpu.memref_slice %arg5[%45, %c0_i32_29] : memref<512x128xf32, #tpu.memory_space<any>> -> memref<1x128xf32, #tpu.memory_space<any>>
    %c3_i32_30 = arith.constant 3 : i32
    %c0_i32_31 = arith.constant 0 : i32
    %50 = tpu.memref_slice %arg8[%c3_i32_30, %c0_i32_31] : memref<8x128xf32, #tpu.memory_space<vmem>> -> memref<1x128xf32, #tpu.memory_space<vmem>>
    %51 = tpu.memref_slice %arg10[%c0_i32_28] : memref<2x!tpu.dma_semaphore, #tpu.memory_space<semaphore_mem>> -> memref<1x!tpu.dma_semaphore, #tpu.memory_space<semaphore_mem>>
    %52 = tpu.memref_squeeze %51 : memref<1x!tpu.dma_semaphore, #tpu.memory_space<semaphore_mem>> -> memref<!tpu.dma_semaphore, #tpu.memory_space<semaphore_mem>>
    tpu.enqueue_dma source(%49 : memref<1x128xf32, #tpu.memory_space<any>>) target(%50 : memref<1x128xf32, #tpu.memory_space<vmem>>) target_semaphore(%52 : memref<!tpu.dma_semaphore, #tpu.memory_space<semaphore_mem>>)
    %c1_i32_32 = arith.constant 1 : i32
    %c0_i32_33 = arith.constant 0 : i32
    %53 = tpu.memref_slice %arg6[%48, %c0_i32_33] : memref<64x128xf32, #tpu.memory_space<any>> -> memref<1x128xf32, #tpu.memory_space<any>>
    %c3_i32_34 = arith.constant 3 : i32
    %c0_i32_35 = arith.constant 0 : i32
    %54 = tpu.memref_slice %arg9[%c3_i32_34, %c0_i32_35] : memref<8x128xf32, #tpu.memory_space<vmem>> -> memref<1x128xf32, #tpu.memory_space<vmem>>
    %55 = tpu.memref_slice %arg10[%c1_i32_32] : memref<2x!tpu.dma_semaphore, #tpu.memory_space<semaphore_mem>> -> memref<1x!tpu.dma_semaphore, #tpu.memory_space<semaphore_mem>>
    %56 = tpu.memref_squeeze %55 : memref<1x!tpu.dma_semaphore, #tpu.memory_space<semaphore_mem>> -> memref<!tpu.dma_semaphore, #tpu.memory_space<semaphore_mem>>
    tpu.enqueue_dma source(%53 : memref<1x128xf32, #tpu.memory_space<any>>) target(%54 : memref<1x128xf32, #tpu.memory_space<vmem>>) target_semaphore(%56 : memref<!tpu.dma_semaphore, #tpu.memory_space<semaphore_mem>>)
    %c4_i32 = arith.constant 4 : i32
    %57 = arith.addi %0, %c4_i32 : i32
    %58 = arith.index_cast %57 : i32 to index
    %59 = memref.load %arg1[%58] : memref<16xi32, #tpu.memory_space<smem>>
    %c4_i32_36 = arith.constant 4 : i32
    %60 = arith.addi %0, %c4_i32_36 : i32
    %61 = arith.index_cast %60 : i32 to index
    %62 = memref.load %arg2[%61] : memref<16xi32, #tpu.memory_space<smem>>
    %c0_i32_37 = arith.constant 0 : i32
    %c0_i32_38 = arith.constant 0 : i32
    %63 = tpu.memref_slice %arg5[%59, %c0_i32_38] : memref<512x128xf32, #tpu.memory_space<any>> -> memref<1x128xf32, #tpu.memory_space<any>>
    %c4_i32_39 = arith.constant 4 : i32
    %c0_i32_40 = arith.constant 0 : i32
    %64 = tpu.memref_slice %arg8[%c4_i32_39, %c0_i32_40] : memref<8x128xf32, #tpu.memory_space<vmem>> -> memref<1x128xf32, #tpu.memory_space<vmem>>
    %65 = tpu.memref_slice %arg10[%c0_i32_37] : memref<2x!tpu.dma_semaphore, #tpu.memory_space<semaphore_mem>> -> memref<1x!tpu.dma_semaphore, #tpu.memory_space<semaphore_mem>>
    %66 = tpu.memref_squeeze %65 : memref<1x!tpu.dma_semaphore, #tpu.memory_space<semaphore_mem>> -> memref<!tpu.dma_semaphore, #tpu.memory_space<semaphore_mem>>
    tpu.enqueue_dma source(%63 : memref<1x128xf32, #tpu.memory_space<any>>) target(%64 : memref<1x128xf32, #tpu.memory_space<vmem>>) target_semaphore(%66 : memref<!tpu.dma_semaphore, #tpu.memory_space<semaphore_mem>>)
    %c1_i32_41 = arith.constant 1 : i32
    %c0_i32_42 = arith.constant 0 : i32
    %67 = tpu.memref_slice %arg6[%62, %c0_i32_42] : memref<64x128xf32, #tpu.memory_space<any>> -> memref<1x128xf32, #tpu.memory_space<any>>
    %c4_i32_43 = arith.constant 4 : i32
    %c0_i32_44 = arith.constant 0 : i32
    %68 = tpu.memref_slice %arg9[%c4_i32_43, %c0_i32_44] : memref<8x128xf32, #tpu.memory_space<vmem>> -> memref<1x128xf32, #tpu.memory_space<vmem>>
    %69 = tpu.memref_slice %arg10[%c1_i32_41] : memref<2x!tpu.dma_semaphore, #tpu.memory_space<semaphore_mem>> -> memref<1x!tpu.dma_semaphore, #tpu.memory_space<semaphore_mem>>
    %70 = tpu.memref_squeeze %69 : memref<1x!tpu.dma_semaphore, #tpu.memory_space<semaphore_mem>> -> memref<!tpu.dma_semaphore, #tpu.memory_space<semaphore_mem>>
    tpu.enqueue_dma source(%67 : memref<1x128xf32, #tpu.memory_space<any>>) target(%68 : memref<1x128xf32, #tpu.memory_space<vmem>>) target_semaphore(%70 : memref<!tpu.dma_semaphore, #tpu.memory_space<semaphore_mem>>)
    %c5_i32 = arith.constant 5 : i32
    %71 = arith.addi %0, %c5_i32 : i32
    %72 = arith.index_cast %71 : i32 to index
    %73 = memref.load %arg1[%72] : memref<16xi32, #tpu.memory_space<smem>>
    %c5_i32_45 = arith.constant 5 : i32
    %74 = arith.addi %0, %c5_i32_45 : i32
    %75 = arith.index_cast %74 : i32 to index
    %76 = memref.load %arg2[%75] : memref<16xi32, #tpu.memory_space<smem>>
    %c0_i32_46 = arith.constant 0 : i32
    %c0_i32_47 = arith.constant 0 : i32
    %77 = tpu.memref_slice %arg5[%73, %c0_i32_47] : memref<512x128xf32, #tpu.memory_space<any>> -> memref<1x128xf32, #tpu.memory_space<any>>
    %c5_i32_48 = arith.constant 5 : i32
    %c0_i32_49 = arith.constant 0 : i32
    %78 = tpu.memref_slice %arg8[%c5_i32_48, %c0_i32_49] : memref<8x128xf32, #tpu.memory_space<vmem>> -> memref<1x128xf32, #tpu.memory_space<vmem>>
    %79 = tpu.memref_slice %arg10[%c0_i32_46] : memref<2x!tpu.dma_semaphore, #tpu.memory_space<semaphore_mem>> -> memref<1x!tpu.dma_semaphore, #tpu.memory_space<semaphore_mem>>
    %80 = tpu.memref_squeeze %79 : memref<1x!tpu.dma_semaphore, #tpu.memory_space<semaphore_mem>> -> memref<!tpu.dma_semaphore, #tpu.memory_space<semaphore_mem>>
    tpu.enqueue_dma source(%77 : memref<1x128xf32, #tpu.memory_space<any>>) target(%78 : memref<1x128xf32, #tpu.memory_space<vmem>>) target_semaphore(%80 : memref<!tpu.dma_semaphore, #tpu.memory_space<semaphore_mem>>)
    %c1_i32_50 = arith.constant 1 : i32
    %c0_i32_51 = arith.constant 0 : i32
    %81 = tpu.memref_slice %arg6[%76, %c0_i32_51] : memref<64x128xf32, #tpu.memory_space<any>> -> memref<1x128xf32, #tpu.memory_space<any>>
    %c5_i32_52 = arith.constant 5 : i32
    %c0_i32_53 = arith.constant 0 : i32
    %82 = tpu.memref_slice %arg9[%c5_i32_52, %c0_i32_53] : memref<8x128xf32, #tpu.memory_space<vmem>> -> memref<1x128xf32, #tpu.memory_space<vmem>>
    %83 = tpu.memref_slice %arg10[%c1_i32_50] : memref<2x!tpu.dma_semaphore, #tpu.memory_space<semaphore_mem>> -> memref<1x!tpu.dma_semaphore, #tpu.memory_space<semaphore_mem>>
    %84 = tpu.memref_squeeze %83 : memref<1x!tpu.dma_semaphore, #tpu.memory_space<semaphore_mem>> -> memref<!tpu.dma_semaphore, #tpu.memory_space<semaphore_mem>>
    tpu.enqueue_dma source(%81 : memref<1x128xf32, #tpu.memory_space<any>>) target(%82 : memref<1x128xf32, #tpu.memory_space<vmem>>) target_semaphore(%84 : memref<!tpu.dma_semaphore, #tpu.memory_space<semaphore_mem>>)
    %c6_i32 = arith.constant 6 : i32
    %85 = arith.addi %0, %c6_i32 : i32
    %86 = arith.index_cast %85 : i32 to index
    %87 = memref.load %arg1[%86] : memref<16xi32, #tpu.memory_space<smem>>
    %c6_i32_54 = arith.constant 6 : i32
    %88 = arith.addi %0, %c6_i32_54 : i32
    %89 = arith.index_cast %88 : i32 to index
    %90 = memref.load %arg2[%89] : memref<16xi32, #tpu.memory_space<smem>>
    %c0_i32_55 = arith.constant 0 : i32
    %c0_i32_56 = arith.constant 0 : i32
    %91 = tpu.memref_slice %arg5[%87, %c0_i32_56] : memref<512x128xf32, #tpu.memory_space<any>> -> memref<1x128xf32, #tpu.memory_space<any>>
    %c6_i32_57 = arith.constant 6 : i32
    %c0_i32_58 = arith.constant 0 : i32
    %92 = tpu.memref_slice %arg8[%c6_i32_57, %c0_i32_58] : memref<8x128xf32, #tpu.memory_space<vmem>> -> memref<1x128xf32, #tpu.memory_space<vmem>>
    %93 = tpu.memref_slice %arg10[%c0_i32_55] : memref<2x!tpu.dma_semaphore, #tpu.memory_space<semaphore_mem>> -> memref<1x!tpu.dma_semaphore, #tpu.memory_space<semaphore_mem>>
    %94 = tpu.memref_squeeze %93 : memref<1x!tpu.dma_semaphore, #tpu.memory_space<semaphore_mem>> -> memref<!tpu.dma_semaphore, #tpu.memory_space<semaphore_mem>>
    tpu.enqueue_dma source(%91 : memref<1x128xf32, #tpu.memory_space<any>>) target(%92 : memref<1x128xf32, #tpu.memory_space<vmem>>) target_semaphore(%94 : memref<!tpu.dma_semaphore, #tpu.memory_space<semaphore_mem>>)
    %c1_i32_59 = arith.constant 1 : i32
    %c0_i32_60 = arith.constant 0 : i32
    %95 = tpu.memref_slice %arg6[%90, %c0_i32_60] : memref<64x128xf32, #tpu.memory_space<any>> -> memref<1x128xf32, #tpu.memory_space<any>>
    %c6_i32_61 = arith.constant 6 : i32
    %c0_i32_62 = arith.constant 0 : i32
    %96 = tpu.memref_slice %arg9[%c6_i32_61, %c0_i32_62] : memref<8x128xf32, #tpu.memory_space<vmem>> -> memref<1x128xf32, #tpu.memory_space<vmem>>
    %97 = tpu.memref_slice %arg10[%c1_i32_59] : memref<2x!tpu.dma_semaphore, #tpu.memory_space<semaphore_mem>> -> memref<1x!tpu.dma_semaphore, #tpu.memory_space<semaphore_mem>>
    %98 = tpu.memref_squeeze %97 : memref<1x!tpu.dma_semaphore, #tpu.memory_space<semaphore_mem>> -> memref<!tpu.dma_semaphore, #tpu.memory_space<semaphore_mem>>
    tpu.enqueue_dma source(%95 : memref<1x128xf32, #tpu.memory_space<any>>) target(%96 : memref<1x128xf32, #tpu.memory_space<vmem>>) target_semaphore(%98 : memref<!tpu.dma_semaphore, #tpu.memory_space<semaphore_mem>>)
    %c7_i32 = arith.constant 7 : i32
    %99 = arith.addi %0, %c7_i32 : i32
    %100 = arith.index_cast %99 : i32 to index
    %101 = memref.load %arg1[%100] : memref<16xi32, #tpu.memory_space<smem>>
    %c7_i32_63 = arith.constant 7 : i32
    %102 = arith.addi %0, %c7_i32_63 : i32
    %103 = arith.index_cast %102 : i32 to index
    %104 = memref.load %arg2[%103] : memref<16xi32, #tpu.memory_space<smem>>
    %c0_i32_64 = arith.constant 0 : i32
    %c0_i32_65 = arith.constant 0 : i32
    %105 = tpu.memref_slice %arg5[%101, %c0_i32_65] : memref<512x128xf32, #tpu.memory_space<any>> -> memref<1x128xf32, #tpu.memory_space<any>>
    %c7_i32_66 = arith.constant 7 : i32
    %c0_i32_67 = arith.constant 0 : i32
    %106 = tpu.memref_slice %arg8[%c7_i32_66, %c0_i32_67] : memref<8x128xf32, #tpu.memory_space<vmem>> -> memref<1x128xf32, #tpu.memory_space<vmem>>
    %107 = tpu.memref_slice %arg10[%c0_i32_64] : memref<2x!tpu.dma_semaphore, #tpu.memory_space<semaphore_mem>> -> memref<1x!tpu.dma_semaphore, #tpu.memory_space<semaphore_mem>>
    %108 = tpu.memref_squeeze %107 : memref<1x!tpu.dma_semaphore, #tpu.memory_space<semaphore_mem>> -> memref<!tpu.dma_semaphore, #tpu.memory_space<semaphore_mem>>
    tpu.enqueue_dma source(%105 : memref<1x128xf32, #tpu.memory_space<any>>) target(%106 : memref<1x128xf32, #tpu.memory_space<vmem>>) target_semaphore(%108 : memref<!tpu.dma_semaphore, #tpu.memory_space<semaphore_mem>>)
    %c1_i32_68 = arith.constant 1 : i32
    %c0_i32_69 = arith.constant 0 : i32
    %109 = tpu.memref_slice %arg6[%104, %c0_i32_69] : memref<64x128xf32, #tpu.memory_space<any>> -> memref<1x128xf32, #tpu.memory_space<any>>
    %c7_i32_70 = arith.constant 7 : i32
    %c0_i32_71 = arith.constant 0 : i32
    %110 = tpu.memref_slice %arg9[%c7_i32_70, %c0_i32_71] : memref<8x128xf32, #tpu.memory_space<vmem>> -> memref<1x128xf32, #tpu.memory_space<vmem>>
    %111 = tpu.memref_slice %arg10[%c1_i32_68] : memref<2x!tpu.dma_semaphore, #tpu.memory_space<semaphore_mem>> -> memref<1x!tpu.dma_semaphore, #tpu.memory_space<semaphore_mem>>
    %112 = tpu.memref_squeeze %111 : memref<1x!tpu.dma_semaphore, #tpu.memory_space<semaphore_mem>> -> memref<!tpu.dma_semaphore, #tpu.memory_space<semaphore_mem>>
    tpu.enqueue_dma source(%109 : memref<1x128xf32, #tpu.memory_space<any>>) target(%110 : memref<1x128xf32, #tpu.memory_space<vmem>>) target_semaphore(%112 : memref<!tpu.dma_semaphore, #tpu.memory_space<semaphore_mem>>)
    %c0_i32_72 = arith.constant 0 : i32
    %c8_i32_73 = arith.constant 8 : i32
    %113 = arith.addi %c0_i32_72, %c8_i32_73 : i32
    %c1_i32_74 = arith.constant 1 : i32
    scf.for %arg11 = %c0_i32_72 to %113 step %c1_i32_74  : i32 {
      %c1_i32_86 = arith.constant 1 : i32
      %136 = arith.muli %arg11, %c1_i32_86 : i32
      %c0_i32_87 = arith.constant 0 : i32
      %137 = arith.addi %c0_i32_87, %136 : i32
      %c8_i32_88 = arith.constant 8 : i32
      %138 = arith.addi %137, %c8_i32_88 : i32
      %c8_i32_89 = arith.constant 8 : i32
      %139 = arith.cmpi slt, %138, %c8_i32_89 : i32
      %140 = arith.extui %139 : i1 to i32
      %c0_i32_90 = arith.constant 0 : i32
      %141 = arith.cmpi ne, %140, %c0_i32_90 : i32
      scf.if %141 {
        %c8_i32_99 = arith.constant 8 : i32
        %150 = arith.addi %137, %c8_i32_99 : i32
        %151 = arith.addi %0, %150 : i32
        %152 = arith.index_cast %151 : i32 to index
        %153 = memref.load %arg1[%152] : memref<16xi32, #tpu.memory_space<smem>>
        %154 = arith.addi %0, %150 : i32
        %155 = arith.index_cast %154 : i32 to index
        %156 = memref.load %arg2[%155] : memref<16xi32, #tpu.memory_space<smem>>
        %c0_i32_100 = arith.constant 0 : i32
        %c0_i32_101 = arith.constant 0 : i32
        %157 = tpu.memref_slice %arg5[%153, %c0_i32_101] : memref<512x128xf32, #tpu.memory_space<any>> -> memref<1x128xf32, #tpu.memory_space<any>>
        %c0_i32_102 = arith.constant 0 : i32
        %158 = tpu.memref_slice %arg8[%150, %c0_i32_102] : memref<8x128xf32, #tpu.memory_space<vmem>> -> memref<1x128xf32, #tpu.memory_space<vmem>>
        %159 = tpu.memref_slice %arg10[%c0_i32_100] : memref<2x!tpu.dma_semaphore, #tpu.memory_space<semaphore_mem>> -> memref<1x!tpu.dma_semaphore, #tpu.memory_space<semaphore_mem>>
        %160 = tpu.memref_squeeze %159 : memref<1x!tpu.dma_semaphore, #tpu.memory_space<semaphore_mem>> -> memref<!tpu.dma_semaphore, #tpu.memory_space<semaphore_mem>>
        tpu.enqueue_dma source(%157 : memref<1x128xf32, #tpu.memory_space<any>>) target(%158 : memref<1x128xf32, #tpu.memory_space<vmem>>) target_semaphore(%160 : memref<!tpu.dma_semaphore, #tpu.memory_space<semaphore_mem>>)
        %c1_i32_103 = arith.constant 1 : i32
        %c0_i32_104 = arith.constant 0 : i32
        %161 = tpu.memref_slice %arg6[%156, %c0_i32_104] : memref<64x128xf32, #tpu.memory_space<any>> -> memref<1x128xf32, #tpu.memory_space<any>>
        %c0_i32_105 = arith.constant 0 : i32
        %162 = tpu.memref_slice %arg9[%150, %c0_i32_105] : memref<8x128xf32, #tpu.memory_space<vmem>> -> memref<1x128xf32, #tpu.memory_space<vmem>>
        %163 = tpu.memref_slice %arg10[%c1_i32_103] : memref<2x!tpu.dma_semaphore, #tpu.memory_space<semaphore_mem>> -> memref<1x!tpu.dma_semaphore, #tpu.memory_space<semaphore_mem>>
        %164 = tpu.memref_squeeze %163 : memref<1x!tpu.dma_semaphore, #tpu.memory_space<semaphore_mem>> -> memref<!tpu.dma_semaphore, #tpu.memory_space<semaphore_mem>>
        tpu.enqueue_dma source(%161 : memref<1x128xf32, #tpu.memory_space<any>>) target(%162 : memref<1x128xf32, #tpu.memory_space<vmem>>) target_semaphore(%164 : memref<!tpu.dma_semaphore, #tpu.memory_space<semaphore_mem>>)
      } else {
      }
      %c0_i32_91 = arith.constant 0 : i32
      %c0_i32_92 = arith.constant 0 : i32
      %c0_i32_93 = arith.constant 0 : i32
      %142 = tpu.memref_slice %arg5[%c0_i32_92, %c0_i32_93] : memref<512x128xf32, #tpu.memory_space<any>> -> memref<1x128xf32, #tpu.memory_space<any>>
      %c0_i32_94 = arith.constant 0 : i32
      %143 = tpu.memref_slice %arg8[%137, %c0_i32_94] : memref<8x128xf32, #tpu.memory_space<vmem>> -> memref<1x128xf32, #tpu.memory_space<vmem>>
      %144 = tpu.memref_slice %arg10[%c0_i32_91] : memref<2x!tpu.dma_semaphore, #tpu.memory_space<semaphore_mem>> -> memref<1x!tpu.dma_semaphore, #tpu.memory_space<semaphore_mem>>
      %145 = tpu.memref_squeeze %144 : memref<1x!tpu.dma_semaphore, #tpu.memory_space<semaphore_mem>> -> memref<!tpu.dma_semaphore, #tpu.memory_space<semaphore_mem>>
      tpu.wait_dma2 semaphore(%145 : memref<!tpu.dma_semaphore, #tpu.memory_space<semaphore_mem>>) src(%142 : memref<1x128xf32, #tpu.memory_space<any>>) dst(%143 : memref<1x128xf32, #tpu.memory_space<vmem>>)
      %c1_i32_95 = arith.constant 1 : i32
      %c0_i32_96 = arith.constant 0 : i32
      %c0_i32_97 = arith.constant 0 : i32
      %146 = tpu.memref_slice %arg6[%c0_i32_96, %c0_i32_97] : memref<64x128xf32, #tpu.memory_space<any>> -> memref<1x128xf32, #tpu.memory_space<any>>
      %c0_i32_98 = arith.constant 0 : i32
      %147 = tpu.memref_slice %arg9[%137, %c0_i32_98] : memref<8x128xf32, #tpu.memory_space<vmem>> -> memref<1x128xf32, #tpu.memory_space<vmem>>
      %148 = tpu.memref_slice %arg10[%c1_i32_95] : memref<2x!tpu.dma_semaphore, #tpu.memory_space<semaphore_mem>> -> memref<1x!tpu.dma_semaphore, #tpu.memory_space<semaphore_mem>>
      %149 = tpu.memref_squeeze %148 : memref<1x!tpu.dma_semaphore, #tpu.memory_space<semaphore_mem>> -> memref<!tpu.dma_semaphore, #tpu.memory_space<semaphore_mem>>
      tpu.wait_dma2 semaphore(%149 : memref<!tpu.dma_semaphore, #tpu.memory_space<semaphore_mem>>) src(%146 : memref<1x128xf32, #tpu.memory_space<any>>) dst(%147 : memref<1x128xf32, #tpu.memory_space<vmem>>)
    }
    %c8_i32_75 = arith.constant 8 : i32
    %c0 = arith.constant 0 : index
    %c0_76 = arith.constant 0 : index
    %114 = vector.load %arg3[%c0, %c0_76] : memref<8x1xi32, #tpu.memory_space<vmem>>, vector<8x1xi32>
    %c0_77 = arith.constant 0 : index
    %c0_78 = arith.constant 0 : index
    %115 = vector.load %arg4[%c0_77, %c0_78] : memref<2x128xf32, #tpu.memory_space<vmem>>, vector<2x128xf32>
    %116 = vector.extract_strided_slice %115 {offsets = [0, 0], sizes = [1, 128], strides = [1, 1]} : vector<2x128xf32> to vector<1x128xf32>
    %117 = vector.shape_cast %116 : vector<1x128xf32> to vector<128xf32>
    %118 = vector.shape_cast %117 : vector<128xf32> to vector<1x128xf32>
    %c1_i32_79 = arith.constant 1 : i32
    %119 = vector.broadcast %c1_i32_79 : i32 to vector<8x1xi32>
    %120 = arith.cmpi eq, %114, %119 : vector<8x1xi32>
    %121 = vector.extract_strided_slice %115 {offsets = [1, 0], sizes = [1, 128], strides = [1, 1]} : vector<2x128xf32> to vector<1x128xf32>
    %122 = vector.shape_cast %121 : vector<1x128xf32> to vector<128xf32>
    %123 = vector.shape_cast %122 : vector<128xf32> to vector<1x128xf32>
    %124 = vector.shape_cast %120 : vector<8x1xi1> to vector<8x1xi1>
    %125 = vector.broadcast %124 : vector<8x1xi1> to vector<8x128xi1>
    %126 = vector.shape_cast %123 : vector<1x128xf32> to vector<1x128xf32>
    %127 = vector.broadcast %126 : vector<1x128xf32> to vector<8x128xf32>
    %128 = vector.shape_cast %118 : vector<1x128xf32> to vector<1x128xf32>
    %129 = vector.broadcast %128 : vector<1x128xf32> to vector<8x128xf32>
    %130 = arith.select %125, %127, %129 : vector<8x128xi1>, vector<8x128xf32>
    %c0_80 = arith.constant 0 : index
    %c0_81 = arith.constant 0 : index
    %131 = vector.load %arg8[%c0_80, %c0_81] : memref<8x128xf32, #tpu.memory_space<vmem>>, vector<8x128xf32>
    %c0_82 = arith.constant 0 : index
    %c0_83 = arith.constant 0 : index
    %132 = vector.load %arg9[%c0_82, %c0_83] : memref<8x128xf32, #tpu.memory_space<vmem>>, vector<8x128xf32>
    %133 = arith.addf %131, %132 : vector<8x128xf32>
    %134 = arith.addf %133, %130 : vector<8x128xf32>
    %c0_84 = arith.constant 0 : index
    %c0_85 = arith.constant 0 : index
    %135 = vector.load %arg7[%c0_84, %c0_85] : memref<8x128xf32, #tpu.memory_space<vmem>>, vector<8x128xf32>
    tpu.vector_store %arg7[%c0_84, %c0_85], %134 {strides = array<i32>} : memref<8x128xf32, #tpu.memory_space<vmem>>, vector<8x128xf32>,
    return
  }
  func.func @transform_0(%arg0: i32, %arg1: memref<16xi32, #tpu.memory_space<smem>>, %arg2: memref<16xi32, #tpu.memory_space<smem>>) -> (i32, i32) {
    %c0_i32 = arith.constant 0 : i32
    %c0_i32_0 = arith.constant 0 : i32
    return %arg0, %c0_i32 : i32, i32
  }
  func.func @transform_1(%arg0: i32, %arg1: memref<16xi32, #tpu.memory_space<smem>>, %arg2: memref<16xi32, #tpu.memory_space<smem>>) -> (i32, i32) {
    %c0_i32 = arith.constant 0 : i32
    %c0_i32_0 = arith.constant 0 : i32
    %c0_i32_1 = arith.constant 0 : i32
    return %c0_i32, %c0_i32_0 : i32, i32
  }
  func.func @transform_4(%arg0: i32, %arg1: memref<16xi32, #tpu.memory_space<smem>>, %arg2: memref<16xi32, #tpu.memory_space<smem>>) -> (i32, i32) {
    %c0_i32 = arith.constant 0 : i32
    %c0_i32_0 = arith.constant 0 : i32
    return %arg0, %c0_i32 : i32, i32
  }
}

</mosaic_0001>

<bundles_post_ra>
// kernel: tpu_custom_call.1
= control target key start
LH: loop header
LB: loop body
LE: loop exit
PB: predicated region body
PF: predicated region fallthrough
CT: control target
= control target key end

     0   :  { %s1230_s27 = smov [#allocation6]   ;;  %s1231_s28 = smov [#allocation7]   ;;  %s1625_s0 = inlined_call_operand.vmem [shape: s32[16], index: 0, kind: input, shape index: {}]   ;;  %s1626_s2 = inlined_call_operand.vmem [shape: s32[16,1], index: 2, kind: input, shape index: {}]   ;;  %s1627_s3 = inlined_call_operand.vmem [shape: f32[2,128], index: 3, kind: input, shape index: {}]   ;;  %s1628_s4 = inlined_call_operand.hbm [shape: f32[512,128], index: 4, kind: input, shape index: {}]   ;;  %s1629_s5 = inlined_call_operand.hbm [shape: f32[64,128], index: 5, kind: input, shape index: {}]   ;;  %s1630_s6 = inlined_call_operand.hbm [shape: f32[16,128], index: 6, kind: output, shape index: {}]   ;;  %s1631_s1 = inlined_call_operand.vmem [shape: s32[16], index: 1, kind: input, shape index: {}]  }
   0x1   :  { %1639 = sst [smem:[#allocation58_spill]] %s1626_s2  ;;  %s12_s23 = sshll.u32 %s1625_s0, 4  ;;  %s13_s23 = int_to_ptr.vmem [resolvable:$true] %s12_s23 }
   0x2   :  { %s17_s26 = sshll.u32 %s1631_s1, 4  ;;  %s18_s26 = int_to_ptr.vmem [resolvable:$true] %s17_s26 }
   0x3   :  { %15 = dma.vmem_to_smem %s13_s23, 16, %s1230_s27, [#allocation5] }
   0x4   :  { %20 = dma.vmem_to_smem %s18_s26, 16, %s1231_s28, [#allocation5] }
   0x5   :  { %1200 = dma.done.wait [#allocation5], 32 }
   0x6   :  { %1201 = vsyncadd [#allocation5], 4294967264 }
   0x7   :  { %23 = sfence }
   0x8   :  { %24 = vsyncpa [#allocation9], 0 }
   0x9   :  { %26 = vsyncpa [#allocation9 + $0x1], 0  ;;  %s1292_s29 = smov 0   ;;  %s1294_s30 = smov 0  }
   0xa   :  { %s1296_s0 = smov 0   ;;  %s1298_s7 = smov 0  }
   0xb LB: > { %1640 = sst [smem:[#allocation54_spill]] %s1220_s0  ;;  %s598_s1 = sadd.s32 4294967295, %s1224_s7   ;;  %s1224_s7 = sphi %s1298_s7, %s1662_s7   ;;  %s1220_s0 = sphi %s1296_s0, %s1664_s0   ;;  %s1216_s30 = sphi %s1294_s30, %s1666_s30   ;;  %s1212_s29 = sphi %s1292_s29, %s1665_s29  }
   0xc   : > { %s599_s8 = sadd.s32 4294967294, %s1224_s7   ;;  %s1315_s9 = sadd.s32 1, %s1224_s7  }
   0xd   : > { %1641 = sst [smem:[#allocation55_spill]] %s1315_s9  ;;  %s86_s10 = sadd.s32 1, %s1220_s0 }
   0xe   : > { %s83_s11 = ssub.s32 %s1224_s7, %s1315_s9  ;;  %p96_p0 = scmp.ne.s32.totalorder %s1220_s0, %s1216_s30 }
   0xf   : > { %p84_p1 = scmp.eq.s32.totalorder %s83_s11, 0  ;;  %p97_p2 = scmp.eq.s32.totalorder %s598_s1, 1 }
  0x10   : > { %p102_p3 = scmp.ne.s32.totalorder %s1216_s30, %s1212_s29  ;;  %p103_p4 = scmp.eq.s32.totalorder %s599_s8, 1 }
  0x11   : > { %s1325_s12 = scalar_select %p84_p1, %s1220_s0, %s86_s10  }
  0x12   : > { %p1327_p5 = por %p97_p2, %p96_p0  ;;  %p1331_p6 = por %p103_p4, %p102_p3 }
  0x13   : > { %1642 = sst [smem:[#allocation56_spill]] %s1325_s12  ;;  %p602_p7 = scmp.ge.s32.totalorder %s1224_s7, 1 }
  0x14   : > { %s1644_s14 = scalar_select %p1331_p6, 1, 0 }
  0x15   : > { %p131_p8 = scmp.lt.s32.totalorder %s1224_s7, 3 }
  0x17   : > { %p132_p9 = pnand %p602_p7, %p131_p8 }
  0x19   : > { %135 = sbr.rel (%p132_p9) target bundleno = 429 (0x1ad), region = 28 }
  0x1e   : > { %s1632_s15 = sand.u32 1, %s1216_s30   ;;  %p152_p10 = scmp.lt.s32.totalorder %s598_s1, 1 }
  0x1f   : > { %s1340_s16 = sshll.u32 %s1632_s15, 3  ;;  %s1342_s17 = sshll.u32 %s598_s1, 3 }
  0x20   : > { %s157_s18 = sld [smem:[#allocation6 + %s1342_s17]]  ;;  %s1668_s1 = smov (!%p152_p10, %s598_s1), 1 }
  0x21   : > { %s158_s19 = sld [smem:[#allocation7 + %s1342_s17]]  ;;  %s604_s20 = sshll.u32 %s1668_s1, 3 }
  0x22   : > { %s1232_s21 = smov [#allocation2]   ;;  %s1645_s2 = sld [smem:[#allocation58_spill]] }
  0x23   : > { %s169_s22 = sshll.u32 %s1232_s21, 4  ;;  %s1233_s10 = smov [#allocation3]   ;;  %s170_s22 = int_to_ptr.vmem [resolvable:$true] %s169_s22 }
  0x24   : > { %s1355_s11 = sshll.u32 %s1233_s10, 4  ;;  %s1364_s27 = scalar_lea.hbm %s1628_s4, 512  ;;  %s185_s11 = int_to_ptr.vmem [resolvable:$true] %s1355_s11 }
  0x26   : > { %s159_s8 = scalar_lea.hbm %s1628_s4, %s157_s18 }
  0x27   : > { %s167_s15 = sshll.u32 %s159_s8, 4  ;;  %s173_s12 = scalar_lea.hbm %s1629_s5, %s158_s19  ;;  %s168_s15 = int_to_ptr.hbm [resolvable:$true] %s167_s15 }
  0x28   : > { %s1349_s25 = scalar_lea.vmem %s1645_s2, %s604_s20  ;;  %s712_s23 = sshra.s32 %s168_s15, 4  ;;  %s713_s23 = int_to_ptr.hbm [resolvable:$true] %s712_s23 }
  0x29   : > { %s714_s20 = scalar_lea.hbm %s713_s23, 1  ;;  %p717_p12 = scmp.lt.s32.totalorder %s713_s23, %s1628_s4 }
  0x2a   : > { %p715_p11 = scmp.ne.s32.totalorder %s713_s23, %s714_s20  ;;  %p718_p13 = scmp.lt.s32.totalorder %s1364_s27, %s714_s20 }
  0x2c   : > { %p719_p0 = por %p718_p13, %p717_p12 }
  0x2e   : > { %p720_p1 = pnand %p719_p0, %p715_p11 }
  0x30   : > { %723 = shalt.err (!%p720_p1)  }
  0x31   : > { %172 = dma.hbm_to_vmem [thread:$0]  %s168_s15, 16, %s170_s22, [#allocation4] }
  0x32   : > { %s182_s19 = sshll.u32 %s173_s12, 4  ;;  %s1646_s8 = sadd.s32 1, %s1342_s17  ;;  %s183_s19 = int_to_ptr.hbm [resolvable:$true] %s182_s19 }
  0x33   : > { %s189_s10 = sld [smem:[#allocation6 + %s1646_s8]]  ;;  %s736_s1 = sshra.s32 %s183_s19, 4  ;;  %s737_s1 = int_to_ptr.hbm [resolvable:$true] %s736_s1 }
  0x34   : > { %s738_s26 = scalar_lea.hbm %s737_s1, 1  ;;  %s1375_s18 = scalar_lea.hbm %s1629_s5, 64 }
  0x35   : > { %p739_p2 = scmp.ne.s32.totalorder %s737_s1, %s738_s26  ;;  %p741_p3 = scmp.lt.s32.totalorder %s737_s1, %s1629_s5 }
  0x36   : > { %p742_p4 = scmp.lt.s32.totalorder %s1375_s18, %s738_s26 }
  0x38   : > { %p743_p7 = por %p742_p4, %p741_p3 }
  0x3a   : > { %p744_p8 = pnand %p743_p7, %p739_p2 }
  0x3c   : > { %747 = shalt.err (!%p744_p8)  }
  0x3d   : > { %187 = dma.hbm_to_vmem [thread:$0]  %s183_s19, 16, %s185_s11, [#allocation4 + $0x1] }
  0x3e   : > { %s1234_s12 = smov [#allocation2 + $0x1]   ;;  %s1647_s22 = smov %s1646_s8 }
  0x3f   : > { %s202_s15 = sshll.u32 %s1234_s12, 4  ;;  %s190_s28 = sld [smem:[#allocation7 + %s1647_s22]]  ;;  %s203_s15 = int_to_ptr.vmem [resolvable:$true] %s202_s15 }
  0x40   : > { %s1235_s8 = smov [#allocation3 + $0x1]   ;;  %s221_s24 = sadd.s32 2, %s1342_s17 }
  0x41   : > { %s1383_s21 = sshll.u32 %s1235_s8, 4  ;;  %s191_s26 = scalar_lea.hbm %s1628_s4, %s189_s10 }
  0x42   : > { %1648 = sst [smem:[#allocation57_spill]] %s1383_s21  ;;  %s200_s20 = sshll.u32 %s191_s26, 4  ;;  %s201_s20 = int_to_ptr.hbm [resolvable:$true] %s200_s20 }
  0x43   : > { %s1390_s11 = sld [smem:[#allocation6 + %s221_s24]]  ;;  %s760_s19 = sshra.s32 %s201_s20, 4  ;;  %s761_s19 = int_to_ptr.hbm [resolvable:$true] %s760_s19 }
  0x44   : > { %s762_s12 = scalar_lea.hbm %s761_s19, 1  ;;  %p765_p10 = scmp.lt.s32.totalorder %s761_s19, %s1628_s4 }
  0x45   : > { %p763_p9 = scmp.ne.s32.totalorder %s761_s19, %s762_s12  ;;  %p766_p11 = scmp.lt.s32.totalorder %s1364_s27, %s762_s12 }
  0x47   : > { %p767_p12 = por %p766_p11, %p765_p10 }
  0x49   : > { %p768_p13 = pnand %p767_p12, %p763_p9 }
  0x4b   : > { %771 = shalt.err (!%p768_p13)  }
  0x4c   : > { %205 = dma.hbm_to_vmem [thread:$0]  %s201_s20, 16, %s203_s15, [#allocation4] }
  0x4d   : > { %s206_s23 = scalar_lea.hbm %s1629_s5, %s190_s28  ;;  %s1236_s1 = smov [#allocation2 + $0x2]  }
  0x4e   : > { %s1399_s26 = sshll.u32 %s1236_s1, 4  ;;  %s215_s21 = sshll.u32 %s206_s23, 4  ;;  %s236_s26 = int_to_ptr.vmem [resolvable:$true] %s1399_s26  ;;  %s216_s21 = int_to_ptr.hbm [resolvable:$true] %s215_s21 }
  0x4f   : > { %s1402_s0 = sld [smem:[#allocation7 + %s221_s24]]  ;;  %s784_s2 = sshra.s32 %s216_s21, 4  ;;  %s785_s2 = int_to_ptr.hbm [resolvable:$true] %s784_s2 }
  0x50   : > { %s786_s19 = scalar_lea.hbm %s785_s2, 1  ;;  %p789_p1 = scmp.lt.s32.totalorder %s785_s2, %s1629_s5 }
  0x51   : > { %p787_p0 = scmp.ne.s32.totalorder %s785_s2, %s786_s19  ;;  %p790_p2 = scmp.lt.s32.totalorder %s1375_s18, %s786_s19 }
  0x53   : > { %p791_p3 = por %p790_p2, %p789_p1 }
  0x55   : > { %p792_p4 = pnand %p791_p3, %p787_p0 }
  0x57   : > { %795 = shalt.err (!%p792_p4)  }
  0x58   : > { %s1649_s28 = sld [smem:[#allocation57_spill]]  ;;  %s224_s8 = scalar_lea.hbm %s1628_s4, %s1390_s11 }
  0x59   : > { %s233_s10 = sshll.u32 %s224_s8, 4  ;;  %s1237_s23 = smov [#allocation3 + $0x2]   ;;  %s234_s10 = int_to_ptr.hbm [resolvable:$true] %s233_s10 }
  0x5a   : > { %s250_s1 = sshll.u32 %s1237_s23, 4  ;;  %s808_s12 = sshra.s32 %s234_s10, 4  ;;  %s251_s1 = int_to_ptr.vmem [resolvable:$true] %s250_s1  ;;  %s809_s12 = int_to_ptr.hbm [resolvable:$true] %s808_s12 }
  0x5b   : > { %s810_s2 = scalar_lea.hbm %s809_s12, 1  ;;  %p813_p8 = scmp.lt.s32.totalorder %s809_s12, %s1628_s4 }
  0x5c   : > { %p811_p7 = scmp.ne.s32.totalorder %s809_s12, %s810_s2  ;;  %p814_p9 = scmp.lt.s32.totalorder %s1364_s27, %s810_s2 }
  0x5e   : > { %s1650_s20 = int_to_ptr.vmem [resolvable:$true] %s1649_s28  ;;  %p815_p10 = por %p814_p9, %p813_p8 }
  0x5f   : > { %220 = dma.hbm_to_vmem [thread:$0]  %s216_s21, 16, %s1650_s20, [#allocation4 + $0x1] }
  0x60   : > { %p816_p11 = pnand %p815_p10, %p811_p7 }
  0x62   : > { %819 = shalt.err (!%p816_p11)  }
  0x63   : > { %238 = dma.hbm_to_vmem [thread:$0]  %s234_s10, 16, %s236_s26, [#allocation4] }
  0x64   : > { %s239_s28 = scalar_lea.hbm %s1629_s5, %s1402_s0  ;;  %s254_s20 = sadd.s32 3, %s1342_s17 }
  0x65   : > { %s248_s22 = sshll.u32 %s239_s28, 4  ;;  %s255_s24 = sld [smem:[#allocation6 + %s254_s20]]  ;;  %s249_s22 = int_to_ptr.hbm [resolvable:$true] %s248_s22 }
  0x66   : > { %s832_s8 = sshra.s32 %s249_s22, 4  ;;  %s833_s8 = int_to_ptr.hbm [resolvable:$true] %s832_s8 }
  0x67   : > { %s834_s23 = scalar_lea.hbm %s833_s8, 1  ;;  %p837_p13 = scmp.lt.s32.totalorder %s833_s8, %s1629_s5 }
  0x68   : > { %p835_p12 = scmp.ne.s32.totalorder %s833_s8, %s834_s23  ;;  %p838_p0 = scmp.lt.s32.totalorder %s1375_s18, %s834_s23 }
  0x6a   : > { %p839_p1 = por %p838_p0, %p837_p13 }
  0x6c   : > { %p840_p2 = pnand %p839_p1, %p835_p12 }
  0x6e   : > { %843 = shalt.err (!%p840_p2)  }
  0x6f   : > { %253 = dma.hbm_to_vmem [thread:$0]  %s249_s22, 16, %s251_s1, [#allocation4 + $0x1] }
  0x70   : > { %s1238_s26 = smov [#allocation2 + $0x3]   ;;  %s256_s10 = sld [smem:[#allocation7 + %s254_s20]] }
  0x71   : > { %s268_s0 = sshll.u32 %s1238_s26, 4  ;;  %s1239_s19 = smov [#allocation3 + $0x3]   ;;  %s269_s0 = int_to_ptr.vmem [resolvable:$true] %s268_s0 }
  0x72   : > { %s1427_s15 = sshll.u32 %s1239_s19, 4  ;;  %s287_s21 = sadd.s32 4, %s1342_s17 }
  0x73   : > { %1651 = sst [smem:[#allocation57_spill]] %s1427_s15  ;;  %s257_s8 = scalar_lea.hbm %s1628_s4, %s255_s24 }
  0x74   : > { %s266_s23 = sshll.u32 %s257_s8, 4  ;;  %s1434_s12 = sld [smem:[#allocation6 + %s287_s21]]  ;;  %s267_s23 = int_to_ptr.hbm [resolvable:$true] %s266_s23 }
  0x75   : > { %s856_s1 = sshra.s32 %s267_s23, 4  ;;  %s857_s1 = int_to_ptr.hbm [resolvable:$true] %s856_s1 }
  0x76   : > { %s858_s22 = scalar_lea.hbm %s857_s1, 1  ;;  %p861_p4 = scmp.lt.s32.totalorder %s857_s1, %s1628_s4 }
  0x77   : > { %p859_p3 = scmp.ne.s32.totalorder %s857_s1, %s858_s22  ;;  %p862_p7 = scmp.lt.s32.totalorder %s1364_s27, %s858_s22 }
  0x79   : > { %p863_p8 = por %p862_p7, %p861_p4 }
  0x7b   : > { %p864_p9 = pnand %p863_p8, %p859_p3 }
  0x7d   : > { %867 = shalt.err (!%p864_p9)  }
  0x7e   : > { %271 = dma.hbm_to_vmem [thread:$0]  %s267_s23, 16, %s269_s0, [#allocation4] }
  0x7f   : > { %s272_s19 = scalar_lea.hbm %s1629_s5, %s256_s10  ;;  %s1240_s11 = smov [#allocation2 + $0x4]  }
  0x80   : > { %s1443_s28 = sshll.u32 %s1240_s11, 4  ;;  %s281_s8 = sshll.u32 %s272_s19, 4  ;;  %s302_s28 = int_to_ptr.vmem [resolvable:$true] %s1443_s28  ;;  %s282_s8 = int_to_ptr.hbm [resolvable:$true] %s281_s8 }
  0x81   : > { %s1446_s15 = sld [smem:[#allocation7 + %s287_s21]]  ;;  %s880_s1 = sshra.s32 %s282_s8, 4  ;;  %s881_s1 = int_to_ptr.hbm [resolvable:$true] %s880_s1 }
  0x82   : > { %s882_s22 = scalar_lea.hbm %s881_s1, 1  ;;  %p885_p11 = scmp.lt.s32.totalorder %s881_s1, %s1629_s5 }
  0x83   : > { %p883_p10 = scmp.ne.s32.totalorder %s881_s1, %s882_s22  ;;  %p886_p12 = scmp.lt.s32.totalorder %s1375_s18, %s882_s22 }
  0x85   : > { %p887_p13 = por %p886_p12, %p885_p11 }
  0x87   : > { %p888_p0 = pnand %p887_p13, %p883_p10 }
  0x89   : > { %891 = shalt.err (!%p888_p0)  }
  0x8a   : > { %s1652_s10 = sld [smem:[#allocation57_spill]]  ;;  %s290_s26 = scalar_lea.hbm %s1628_s4, %s1434_s12 }
  0x8b   : > { %s299_s24 = sshll.u32 %s290_s26, 4  ;;  %s1241_s19 = smov [#allocation3 + $0x4]   ;;  %s300_s24 = int_to_ptr.hbm [resolvable:$true] %s299_s24 }
  0x8c   : > { %s316_s11 = sshll.u32 %s1241_s19, 4  ;;  %s904_s20 = sshra.s32 %s300_s24, 4  ;;  %s317_s11 = int_to_ptr.vmem [resolvable:$true] %s316_s11  ;;  %s905_s20 = int_to_ptr.hbm [resolvable:$true] %s904_s20 }
  0x8d   : > { %s906_s1 = scalar_lea.hbm %s905_s20, 1  ;;  %p909_p2 = scmp.lt.s32.totalorder %s905_s20, %s1628_s4 }
  0x8e   : > { %p907_p1 = scmp.ne.s32.totalorder %s905_s20, %s906_s1  ;;  %p910_p3 = scmp.lt.s32.totalorder %s1364_s27, %s906_s1 }
  0x90   : > { %s1653_s23 = int_to_ptr.vmem [resolvable:$true] %s1652_s10  ;;  %p911_p4 = por %p910_p3, %p909_p2 }
  0x91   : > { %286 = dma.hbm_to_vmem [thread:$0]  %s282_s8, 16, %s1653_s23, [#allocation4 + $0x1] }
  0x92   : > { %p912_p7 = pnand %p911_p4, %p907_p1 }
  0x94   : > { %915 = shalt.err (!%p912_p7)  }
  0x95   : > { %304 = dma.hbm_to_vmem [thread:$0]  %s300_s24, 16, %s302_s28, [#allocation4] }
  0x96   : > { %s305_s10 = scalar_lea.hbm %s1629_s5, %s1446_s15  ;;  %s320_s23 = sadd.s32 5, %s1342_s17 }
  0x97   : > { %s314_s2 = sshll.u32 %s305_s10, 4  ;;  %s321_s21 = sld [smem:[#allocation6 + %s320_s23]]  ;;  %s315_s2 = int_to_ptr.hbm [resolvable:$true] %s314_s2 }
  0x98   : > { %s928_s26 = sshra.s32 %s315_s2, 4  ;;  %s929_s26 = int_to_ptr.hbm [resolvable:$true] %s928_s26 }
  0x99   : > { %s930_s19 = scalar_lea.hbm %s929_s26, 1  ;;  %p933_p9 = scmp.lt.s32.totalorder %s929_s26, %s1629_s5 }
  0x9a   : > { %p931_p8 = scmp.ne.s32.totalorder %s929_s26, %s930_s19  ;;  %p934_p10 = scmp.lt.s32.totalorder %s1375_s18, %s930_s19 }
  0x9c   : > { %p935_p11 = por %p934_p10, %p933_p9 }
  0x9e   : > { %p936_p12 = pnand %p935_p11, %p931_p8 }
  0xa0   : > { %939 = shalt.err (!%p936_p12)  }
  0xa1   : > { %319 = dma.hbm_to_vmem [thread:$0]  %s315_s2, 16, %s317_s11, [#allocation4 + $0x1] }
  0xa2   : > { %s1242_s28 = smov [#allocation2 + $0x5]   ;;  %s322_s24 = sld [smem:[#allocation7 + %s320_s23]] }
  0xa3   : > { %s334_s15 = sshll.u32 %s1242_s28, 4  ;;  %s1243_s22 = smov [#allocation3 + $0x5]   ;;  %s335_s15 = int_to_ptr.vmem [resolvable:$true] %s334_s15 }
  0xa4   : > { %s1471_s0 = sshll.u32 %s1243_s22, 4  ;;  %s353_s12 = sadd.s32 6, %s1342_s17 }
  0xa5   : > { %1654 = sst [smem:[#allocation57_spill]] %s1471_s0  ;;  %s323_s26 = scalar_lea.hbm %s1628_s4, %s321_s21 }
  0xa6   : > { %s332_s19 = sshll.u32 %s323_s26, 4  ;;  %s1478_s20 = sld [smem:[#allocation6 + %s353_s12]]  ;;  %s333_s19 = int_to_ptr.hbm [resolvable:$true] %s332_s19 }
  0xa7   : > { %s952_s11 = sshra.s32 %s333_s19, 4  ;;  %s953_s11 = int_to_ptr.hbm [resolvable:$true] %s952_s11 }
  0xa8   : > { %s954_s2 = scalar_lea.hbm %s953_s11, 1  ;;  %p957_p0 = scmp.lt.s32.totalorder %s953_s11, %s1628_s4 }
  0xa9   : > { %p955_p13 = scmp.ne.s32.totalorder %s953_s11, %s954_s2  ;;  %p958_p1 = scmp.lt.s32.totalorder %s1364_s27, %s954_s2 }
  0xab   : > { %p959_p2 = por %p958_p1, %p957_p0 }
  0xad   : > { %p960_p3 = pnand %p959_p2, %p955_p13 }
  0xaf   : > { %963 = shalt.err (!%p960_p3)  }
  0xb0   : > { %337 = dma.hbm_to_vmem [thread:$0]  %s333_s19, 16, %s335_s15, [#allocation4] }
  0xb1   : > { %s338_s22 = scalar_lea.hbm %s1629_s5, %s322_s24  ;;  %s1244_s8 = smov [#allocation2 + $0x6]  }
  0xb2   : > { %s1487_s10 = sshll.u32 %s1244_s8, 4  ;;  %s347_s26 = sshll.u32 %s338_s22, 4  ;;  %s368_s10 = int_to_ptr.vmem [resolvable:$true] %s1487_s10  ;;  %s348_s26 = int_to_ptr.hbm [resolvable:$true] %s347_s26 }
  0xb3   : > { %s1490_s0 = sld [smem:[#allocation7 + %s353_s12]]  ;;  %s976_s11 = sshra.s32 %s348_s26, 4  ;;  %s977_s11 = int_to_ptr.hbm [resolvable:$true] %s976_s11 }
  0xb4   : > { %s978_s2 = scalar_lea.hbm %s977_s11, 1  ;;  %p981_p7 = scmp.lt.s32.totalorder %s977_s11, %s1629_s5 }
  0xb5   : > { %p979_p4 = scmp.ne.s32.totalorder %s977_s11, %s978_s2  ;;  %p982_p8 = scmp.lt.s32.totalorder %s1375_s18, %s978_s2 }
  0xb7   : > { %p983_p9 = por %p982_p8, %p981_p7 }
  0xb9   : > { %p984_p10 = pnand %p983_p9, %p979_p4 }
  0xbb   : > { %987 = shalt.err (!%p984_p10)  }
  0xbc   : > { %s1655_s24 = sld [smem:[#allocation57_spill]]  ;;  %s356_s28 = scalar_lea.hbm %s1628_s4, %s1478_s20 }
  0xbd   : > { %s365_s21 = sshll.u32 %s356_s28, 4  ;;  %s1245_s22 = smov [#allocation3 + $0x6]   ;;  %s366_s21 = int_to_ptr.hbm [resolvable:$true] %s365_s21 }
  0xbe   : > { %s382_s8 = sshll.u32 %s1245_s22, 4  ;;  %s1000_s23 = sshra.s32 %s366_s21, 4  ;;  %s383_s8 = int_to_ptr.vmem [resolvable:$true] %s382_s8  ;;  %s1001_s23 = int_to_ptr.hbm [resolvable:$true] %s1000_s23 }
  0xbf   : > { %s1002_s11 = scalar_lea.hbm %s1001_s23, 1  ;;  %p1005_p12 = scmp.lt.s32.totalorder %s1001_s23, %s1628_s4 }
  0xc0   : > { %p1003_p11 = scmp.ne.s32.totalorder %s1001_s23, %s1002_s11  ;;  %p1006_p13 = scmp.lt.s32.totalorder %s1364_s27, %s1002_s11 }
  0xc2   : > { %s1656_s19 = int_to_ptr.vmem [resolvable:$true] %s1655_s24  ;;  %p1007_p0 = por %p1006_p13, %p1005_p12 }
  0xc3   : > { %352 = dma.hbm_to_vmem [thread:$0]  %s348_s26, 16, %s1656_s19, [#allocation4 + $0x1] }
  0xc4   : > { %p1008_p1 = pnand %p1007_p0, %p1003_p11 }
  0xc6   : > { %1011 = shalt.err (!%p1008_p1)  }
  0xc7   : > { %370 = dma.hbm_to_vmem [thread:$0]  %s366_s21, 16, %s368_s10, [#allocation4] }
  0xc8   : > { %s371_s24 = scalar_lea.hbm %s1629_s5, %s1490_s0  ;;  %s386_s19 = sadd.s32 7, %s1342_s17 }
  0xc9   : > { %s380_s1 = sshll.u32 %s371_s24, 4  ;;  %s387_s12 = sld [smem:[#allocation6 + %s386_s19]]  ;;  %s381_s1 = int_to_ptr.hbm [resolvable:$true] %s380_s1 }
  0xca   : > { %s1024_s28 = sshra.s32 %s381_s1, 4  ;;  %s1025_s28 = int_to_ptr.hbm [resolvable:$true] %s1024_s28 }
  0xcb   : > { %s1026_s22 = scalar_lea.hbm %s1025_s28, 1  ;;  %p1029_p3 = scmp.lt.s32.totalorder %s1025_s28, %s1629_s5 }
  0xcc   : > { %p1027_p2 = scmp.ne.s32.totalorder %s1025_s28, %s1026_s22  ;;  %p1030_p4 = scmp.lt.s32.totalorder %s1375_s18, %s1026_s22 }
  0xce   : > { %p1031_p7 = por %p1030_p4, %p1029_p3 }
  0xd0   : > { %p1032_p8 = pnand %p1031_p7, %p1027_p2 }
  0xd2   : > { %1035 = shalt.err (!%p1032_p8)  }
  0xd3   : > { %385 = dma.hbm_to_vmem [thread:$0]  %s381_s1, 16, %s383_s8, [#allocation4 + $0x1] }
  0xd4   : > { %s1246_s10 = smov [#allocation2 + $0x7]   ;;  %s388_s21 = sld [smem:[#allocation7 + %s386_s19]] }
  0xd5   : > { %s400_s0 = sshll.u32 %s1246_s10, 4  ;;  %s389_s20 = scalar_lea.hbm %s1628_s4, %s387_s12  ;;  %s401_s0 = int_to_ptr.vmem [resolvable:$true] %s400_s0 }
  0xd6   : > { %s398_s26 = sshll.u32 %s389_s20, 4  ;;  %s1247_s24 = smov [#allocation3 + $0x7]   ;;  %s399_s26 = int_to_ptr.hbm [resolvable:$true] %s398_s26 }
  0xd7   : > { %s415_s9 = sshll.u32 %s1247_s24, 4  ;;  %s1048_s23 = sshra.s32 %s399_s26, 4  ;;  %s1049_s23 = int_to_ptr.hbm [resolvable:$true] %s1048_s23  ;;  %s416_s9 = int_to_ptr.vmem [resolvable:$true] %s415_s9 }
  0xd8   : > { %s1050_s28 = scalar_lea.hbm %s1049_s23, 1  ;;  %p1053_p10 = scmp.lt.s32.totalorder %s1049_s23, %s1628_s4 }
  0xd9   : > { %p1051_p9 = scmp.ne.s32.totalorder %s1049_s23, %s1050_s28  ;;  %p1054_p11 = scmp.lt.s32.totalorder %s1364_s27, %s1050_s28 }
  0xdb   : > { %p1055_p12 = por %p1054_p11, %p1053_p10 }
  0xdd   : > { %p1056_p13 = pnand %p1055_p12, %p1051_p9 }
  0xdf   : > { %1059 = shalt.err (!%p1056_p13)  }
  0xe0   : > { %403 = dma.hbm_to_vmem [thread:$0]  %s399_s26, 16, %s401_s0, [#allocation4] }
  0xe1   : > { %s404_s1 = scalar_lea.hbm %s1629_s5, %s388_s21 }
  0xe2   : > { %s413_s12 = sshll.u32 %s404_s1, 4  ;;  %s414_s12 = int_to_ptr.hbm [resolvable:$true] %s413_s12 }
  0xe3   : > { %s1072_s10 = sshra.s32 %s414_s12, 4  ;;  %s1073_s10 = int_to_ptr.hbm [resolvable:$true] %s1072_s10 }
  0xe4   : > { %s1074_s2 = scalar_lea.hbm %s1073_s10, 1  ;;  %p1077_p1 = scmp.lt.s32.totalorder %s1073_s10, %s1629_s5 }
  0xe5   : > { %p1075_p0 = scmp.ne.s32.totalorder %s1073_s10, %s1074_s2  ;;  %p1078_p2 = scmp.lt.s32.totalorder %s1375_s18, %s1074_s2 }
  0xe7   : > { %p1079_p3 = por %p1078_p2, %p1077_p1 }
  0xe9   : > { %p1080_p4 = pnand %p1079_p3, %p1075_p0 }
  0xeb   : > { %1083 = shalt.err (!%p1080_p4)  }
  0xec   : > { %418 = dma.hbm_to_vmem [thread:$0]  %s414_s12, 16, %s416_s9, [#allocation4 + $0x1] }
  0xed   : > { %s1530_s26 = smov 0  }
  0xee LB: >> { %s425_s21 = sadd.s32 8, %s1228_s26  ;;  %s560_s28 = scalar_lea.vmem [#allocation2], %s1228_s26  ;;  %s1228_s26 = sphi %s1530_s26, %s424_s26  }
  0xef   : >> { %p1536_p7 = scmp.lt.s32.totalorder %s425_s21, 8  ;;  %s430_s9 = sadd.s32 %s1342_s17, %s425_s21 }
  0xf0   : >> { %s561_s22 = scalar_lea.vmem %s560_s28, 8 [#allocation2]  ;;  %s563_s12 = scalar_lea.vmem [#allocation3], %s1228_s26 }
  0xf1   : >> { %s614_s23 = scalar_select %p1536_p7, [#allocation6], [#allocation48] }
  0xf2   : >> { %s1670_s9 = smov (!%p1536_p7, %s430_s9), 0  ;;  %s444_s19 = sshll.u32 %s561_s22, 4  ;;  %s445_s19 = int_to_ptr.vmem [resolvable:$true] %s444_s19 }
  0xf3   : >> { %s431_s11 = sld [smem:[%s614_s23 + %s1670_s9]]  ;;  %s1551_s10 = scalar_lea.vmem %s563_s12, 8 [#allocation3] }
  0xf4   : >> { %s616_s8 = scalar_select %p1536_p7, [#allocation7], [#allocation49] }
  0xf5   : >> { %s459_s0 = sshll.u32 %s1551_s10, 4  ;;  %s460_s0 = int_to_ptr.vmem [resolvable:$true] %s459_s0 }
  0xf6   : >> { %s1548_s1 = sld [smem:[%s616_s8 + %s1670_s9]] }
  0xf9   : >> { %s433_s20 = scalar_lea.hbm %s1628_s4, %s431_s11 }
  0xfa   : >> { %s442_s21 = sshll.u32 %s433_s20, 4  ;;  %s443_s21 = int_to_ptr.hbm [resolvable:$true] %s442_s21 }
  0xfb   : >> { %s1096_s28 = sshra.s32 %s443_s21, 4  ;;  %s1097_s28 = int_to_ptr.hbm [resolvable:$true] %s1096_s28 }
  0xfc   : >> { %s1098_s23 = scalar_lea.hbm %s1097_s28, 1  ;;  %p1103_p11 = scmp.lt.s32.totalorder %s1097_s28, %s1628_s4 }
  0xfd   : >> { %p1099_p8 = scmp.ne.s32.totalorder %s1097_s28, %s1098_s23  ;;  %p1104_p12 = scmp.lt.s32.totalorder %s1364_s27, %s1098_s23 }
  0xff   : >> { %p1100_p9 = pnand %p1099_p8, %p1536_p7  ;;  %p1105_p13 = por %p1104_p12, %p1103_p11 }
 0x101   : >> { %p1101_p10 = pneg %p1100_p9 }
 0x103   : >> { %p1106_p0 = pnand %p1105_p13, %p1101_p10 }
 0x105   : >> { %1109 = shalt.err (!%p1106_p0)  }
 0x106   : >> { %s1110_s11 = sshra.s32 %s445_s19, 4  ;;  %s1248_s12 = smov [#allocation2]   ;;  %s1111_s11 = int_to_ptr.vmem [resolvable:$true] %s1110_s11 }
 0x107   : >> { %s1112_s8 = scalar_lea.vmem %s1111_s11, 1  ;;  %s1116_s10 = scalar_lea.vmem %s1248_s12, 8 }
 0x108   : >> { %p1113_p1 = scmp.ne.s32.totalorder %s1111_s11, %s1112_s8  ;;  %p1117_p4 = scmp.lt.s32.totalorder %s1111_s11, [#allocation2] }
 0x109   : >> { %p1118_p8 = scmp.lt.s32.totalorder %s1116_s10, %s1112_s8 }
 0x10a   : >> { %p1114_p2 = pnand %p1113_p1, %p1536_p7 }
 0x10b   : >> { %p1119_p9 = por %p1118_p8, %p1117_p4 }
 0x10c   : >> { %p1115_p3 = pneg %p1114_p2 }
 0x10e   : >> { %p1120_p6 = pnand %p1119_p9, %p1115_p3 }
 0x110   : >> { %1123 = shalt.err (!%p1120_p6)  }
 0x111   : >> { %618 = dma.hbm_to_vmem [thread:$0]  (%p1536_p7), %s443_s21, 16, %s445_s19, [#allocation4] }
 0x112   : >> { %s448_s20 = scalar_lea.hbm %s1629_s5, %s1548_s1 }
 0x113   : >> { %s457_s28 = sshll.u32 %s448_s20, 4  ;;  %s458_s28 = int_to_ptr.hbm [resolvable:$true] %s457_s28 }
 0x114   : >> { %s1124_s23 = sshra.s32 %s458_s28, 4  ;;  %s1125_s23 = int_to_ptr.hbm [resolvable:$true] %s1124_s23 }
 0x115   : >> { %s1126_s9 = scalar_lea.hbm %s1125_s23, 1  ;;  %p1131_p12 = scmp.lt.s32.totalorder %s1125_s23, %s1629_s5 }
 0x116   : >> { %p1127_p10 = scmp.ne.s32.totalorder %s1125_s23, %s1126_s9  ;;  %p1132_p13 = scmp.lt.s32.totalorder %s1375_s18, %s1126_s9 }
 0x118   : >> { %p1128_p11 = pnand %p1127_p10, %p1536_p7  ;;  %p1133_p0 = por %p1132_p13, %p1131_p12 }
 0x11a   : >> { %p1129_p6 = pneg %p1128_p11 }
 0x11c   : >> { %p1134_p1 = pnand %p1133_p0, %p1129_p6 }
 0x11e   : >> { %1137 = shalt.err (!%p1134_p1)  }
 0x11f   : >> { %s1138_s19 = sshra.s32 %s460_s0, 4  ;;  %s1249_s21 = smov [#allocation3]   ;;  %s1139_s19 = int_to_ptr.vmem [resolvable:$true] %s1138_s19 }
 0x120   : >> { %s1140_s1 = scalar_lea.vmem %s1139_s19, 1  ;;  %s1144_s8 = scalar_lea.vmem %s1249_s21, 8 }
 0x121   : >> { %p1141_p2 = scmp.ne.s32.totalorder %s1139_s19, %s1140_s1  ;;  %p1145_p8 = scmp.lt.s32.totalorder %s1139_s19, [#allocation3] }
 0x122   : >> { %p1146_p9 = scmp.lt.s32.totalorder %s1144_s8, %s1140_s1 }
 0x123   : >> { %p1142_p3 = pnand %p1141_p2, %p1536_p7 }
 0x124   : >> { %p1147_p10 = por %p1146_p9, %p1145_p8 }
 0x125   : >> { %p1143_p4 = pneg %p1142_p3 }
 0x127   : >> { %p1148_p11 = pnand %p1147_p10, %p1143_p4 }
 0x129   : >> { %1151 = shalt.err (!%p1148_p11)  }
 0x12a   : >> { %619 = dma.hbm_to_vmem [thread:$0]  (%p1536_p7), %s458_s28, 16, %s460_s0, [#allocation4 + $0x1] }
 0x12b   : >> { %1202 = dma.done.wait [#allocation4], 16 }
 0x12c   : >> { %1203 = vsyncadd [#allocation4], 4294967280 }
 0x12d   : >> { %1204 = dma.done.wait [#allocation4 + $0x1], 16 }
 0x12e   : >> { %1205 = vsyncadd [#allocation4 + $0x1], 4294967280  ;;  %s424_s26 = sadd.s32 1, %s1228_s26  }
 0x12f   : >> { %p421_p6 = scmp.ge.s32.totalorder %s424_s26, 8  }
 0x130   : > { %v468_v0 = vld [vmem:[%s1349_s25] sm:$0xff] (%p421_p6)  ;;  %v1250_v1 = vmov (%p421_p6), 0   ;;  %v480_v5 = vld [vmem:[#allocation3] sm:$0xff] (%p421_p6)  ;;  %s495_s27 = scalar_lea.hbm (%p421_p6), %s1630_s6, %s1342_s17  ;;  %s1658_s25 = scalar_lea.vmem (%p421_p6), [#allocation8], %s1340_s16 }
 0x131   : > { %423 = sbr.rel (!%p421_p6) target bundleno = 238 (0xee), region = 182  ;;  %687 = vset.pattern.permute.xlu0 (%p421_p6), %v1250_v1  ;;  %vm470_vm0 = vcmp.eq.s32.totalorder (%p421_p6), %v468_v0, 1  ;;  %v469_v3 = vld [vmem:[%s1627_s3] sm:$0x3] (%p421_p6)  ;;  %s497_s18 = sshll.u32 (%p421_p6), %s1658_s25, 4  ;;  %s498_s18 = int_to_ptr.vmem [resolvable:$true] %s497_s18 }
 0x132   : > { %v471_v2 = vsel (%p421_p6), %vm470_vm0, 1, %v1250_v1  ;;  %v479_v4 = vld [vmem:[#allocation2] sm:$0xff] (%p421_p6)  ;;  %v476_v6 = vperm.slane (%p421_p6), %v469_v3, 1  ;;  %v477_v7 = vperm.slane (%p421_p6), %v469_v3, 0  ;;  %s499_s10 = sshll.u32 (%p421_p6), %s495_s27, 4  ;;  %s1659_s2 = smov (%p421_p6), %s1658_s25  ;;  %s500_s10 = int_to_ptr.hbm [resolvable:$true] %s499_s10 }
 0x133   : > { %473 = vperm.xlu0 (%p421_p6), %687, %v471_v2   ;;  %v481_v8 = vadd.f32 (%p421_p6), %v480_v5, %v479_v4  ;;  %s1660_s15 = sand.u32 (%p421_p6), 1, %s1216_s30   ;;  %s1166_s28 = sshra.s32 (%p421_p6), %s500_s10, 4  ;;  %s1167_s28 = int_to_ptr.hbm [resolvable:$true] %s1166_s28 }
 0x134   : > { %s485_s20 = scalar_lea.sflag (%p421_p6), [#allocation9], %s1660_s15  ;;  %s1168_s17 = scalar_lea.hbm (%p421_p6), %s1167_s28, 8 }
 0x135   : > { %p1169_p7 = scmp.ne.s32.totalorder (%p421_p6), %s1167_s28, %s1168_s17  ;;  %s1172_s22 = scalar_lea.hbm (%p421_p6), %s1630_s6, 16 }
 0x136   : > { %p1173_p0 = scmp.lt.s32.totalorder %s1167_s28, %s1630_s6  ;;  %p1174_p1 = scmp.lt.s32.totalorder %s1172_s22, %s1168_s17 }
 0x137   : > { %p1170_p12 = pnand %p1169_p7, %p1327_p5 }
 0x138   : > { %p1175_p2 = por %p1174_p1, %p1173_p0 }
 0x139   : > { %p1171_p13 = pneg %p1170_p12 }
 0x13b   : > { %p1176_p3 = pnand %p1175_p2, %p1171_p13 }
 0x1a5   : > { %v474_v9 = vpop.permute.xlu0 %473 }
 0x1a6   : > { %vm475_vm1 = vcmp.eq.s32.totalorder %v474_v9, 1 }
 0x1a7   : > { %v478_v10 = vsel %vm475_vm1, %v476_v6, %v477_v7 }
 0x1a8   : > { %v482_v11 = vadd.f32 %v481_v8, %v478_v10 }
 0x1aa   : > { %483 = vst [vmem:[%s1659_s2] sm:$0xff] %v482_v11 }
 0x1ab   : > { %1179 = shalt.err (!%p1176_p3)
}
 0x1ac   : > { %620 = dma.vmem_to_hbm [thread:$0]  (%p1327_p5), %s498_s18, 128, %s500_s10, %s485_s20  }
 0x1ad PF: > { %p627_p4 = scmp.ge.s32.totalorder %s1224_s7, 2  ;;  %s511_s16 = sand.u32 1, %s1212_s29  }
 0x1ae   : > { %p1661_p8 = scmp.ne.s32.totalorder %s1644_s14, 0  ;;  %s512_s1 = scalar_lea.sflag [#allocation9], %s511_s16 }
 0x1b0   : > { %p623_p9 = pnand %p627_p4, %p1661_p8 }
 0x1b2   : > { %p624_p10 = pneg %p623_p9 }
 0x1b4   : > { %1207 = dma.done.wait (%p624_p10), %s512_s1, 128  }
 0x1b5   : > { %1209 = vsyncadd (%p624_p10), %s512_s1, 4294967168  ;;  %s1662_s7 = sld [smem:[#allocation55_spill]]  ;;  %s1665_s29 = smov %s1216_s30 }
 0x1b6   : > { %s1663_s21 = sld [smem:[#allocation54_spill]] }
 0x1b7   : > { %s1664_s0 = sld [smem:[#allocation56_spill]] }
 0x1bb   : > { %p29_p11 = scmp.ge.s32.totalorder %s1662_s7, 4  }
 0x1bc   : > { %s1666_s30 = smov %s1663_s21 }
 0x1bd   :  { %31 = sbr.rel (!%p29_p11) target bundleno = 11 (0xb), region = 193 }
 0x1c2   :  { %518 = vsyncpa [#allocation9], 1 }
 0x1c3   :  { %520 = vsyncpa [#allocation9 + $0x1], 1 }
 0x1c4   :  { %521 = vsyncmov [#allocation4] }
 0x1c7   :  { %s522_s13 = vpop.sfrf %521 }
 0x1c8   :  { %p611_p5 = scmp.ne.s32.totalorder %s522_s13, 0 }
 0x1ca   :  { %526 = shalt.err (%p611_p5)  }
 0x1cb   :  { %528 = vsyncmov [#allocation4 + $0x1] }
 0x1ce   :  { %s529_s14 = vpop.sfrf %528 }
 0x1cf   :  { %p612_p6 = scmp.ne.s32.totalorder %s529_s14, 0 }
 0x1d1   :  { %533 = shalt.err (%p612_p6)  }

</bundles_post_ra>
